<compile_context>
chip_gen: v6e
topology: v6e:2x2x1
jax: 0.10.0
libtpu: 0.0.40
codegen_flags: <defaults>
</compile_context>

<pallas_src>
import jax
import jax.numpy as jnp
from jax.experimental import pallas as pl
from jax.experimental.pallas import tpu as pltpu


def _attn_scores_kernel(x_ref, w1_ref, b1_ref, w2_ref, b2_ref, o_ref):
    # x_ref: (tile, C)  w1_ref: (C, H)  b1_ref: (1, H)  w2_ref: (H, K)  b2_ref: (1, K)
    # o_ref: (tile, K).  Biases are always f32; x/w1/w2 may be bf16 (f32 accumulate).
    x = x_ref[...]

    # Linear 1 + ReLU (MXU matmul, f32 accumulation).
    h = jnp.dot(x, w1_ref[...], preferred_element_type=jnp.float32) + b1_ref[...]
    h = jnp.maximum(h, 0.0)

    # Linear 2 (1/temperature already folded into w2/b2 by the wrapper).
    s = jnp.dot(h.astype(w2_ref.dtype), w2_ref[...],
                preferred_element_type=jnp.float32) + b2_ref[...]

    # Numerically stable softmax over K; all-f32 epilogue (v5e VPU/EUP lack bf16).
    s_max = jnp.max(s, axis=-1, keepdims=True)        # XLU row reduction
    e = jnp.exp(s - s_max)                            # EUP
    denom = jnp.sum(e, axis=-1, keepdims=True)        # XLU row reduction
    # Exact divide (NOT pl.reciprocal(approx=True)): rows sum to 1 to f32
    # rounding, matching PyTorch softmax.  The kernel is HBM-read-bound, so
    # this costs nothing.
    o_ref[...] = (e / denom).astype(o_ref.dtype)

    # TODO(synk): K=8 pads the output VMEM block 8->128 lanes and the store is a
    # masked vst.msk.  A lane-dense (tile, 8) -> (tile*8//128, 128) in-kernel
    # reshape would fix that, but that minor-dim reshape is not reliably lowered
    # by Mosaic; the output stream is 4x smaller than the x read stream, so the
    # kernel stays read-bound either way.


_TINY_N = 16  # below this, a single no-grid VMEM-resident call is cheapest.


def _choose_tile(n, target):
    """Row-tile: multiple of 8, capped at `target`, and small enough that the
    grid has >= 2 blocks (so the 'parallel' axis feeds both v7x TensorCores)."""
    half = -(-n // 2)            # cdiv(n, 2)
    half = -(-half // 8) * 8     # round up to a sublane multiple
    return max(8, min(target, half))


def attention_scores(x, params, temperature=1.0, *, tile_n=512, input_dtype=None):
    """Softmax attention scores: (N, C) -> (N, K).  This is the op to consume/fuse.

    input_dtype: optionally jnp.bfloat16 to halve the HBM read stream for the
    large-N, bandwidth-bound path on v6e/v7x (matmuls still accumulate in f32,
    softmax stays f32).
    """
    n, c = x.shape
    h_dim = params["w1"].shape[1]
    k = params["w2"].shape[1]

    inv_t = jnp.float32(1.0 / float(temperature))
    w1 = params["w1"]
    b1 = params["b1"].reshape(1, h_dim).astype(jnp.float32)
    # Fold 1/T into the second linear: softmax((h@w2 + b2)/T) == softmax(h@(w2/T) + b2/T).
    w2 = params["w2"] * inv_t
    b2 = (params["b2"] * inv_t).reshape(1, k).astype(jnp.float32)

    if input_dtype is not None:
        x = x.astype(input_dtype)
        w1 = w1.astype(input_dtype)
        w2 = w2.astype(input_dtype)

    if n < _TINY_N:
        # --- Tiny-N path (module-typical): single VMEM-resident block, no grid,
        # no software-pipeline prologue/epilogue, no double-buffering.
        vmem = pl.BlockSpec(memory_space=pltpu.MemorySpace.VMEM)
        return pl.pallas_call(
            _attn_scores_kernel,
            out_shape=jax.ShapeDtypeStruct((n, k), jnp.float32),
            in_specs=[vmem, vmem, vmem, vmem, vmem],
            out_specs=vmem,
        )(x, w1, b1, w2, b2)

    # --- Tiled path: rows are split into >= 2 blocks; weights/biases use constant
    # index_maps so they DMA once and stay resident.  N is padded up to a tile
    # multiple (padded rows are computed and discarded) so VMEM stays bounded
    # and there is no single-giant-block fallback.
    tile = _choose_tile(n, tile_n)
    num_blocks = pl.cdiv(n, tile)
    n_pad = num_blocks * tile
    if n_pad != n:
        x = jnp.pad(x, ((0, n_pad - n), (0, 0)))

    out = pl.pallas_call(
        _attn_scores_kernel,
        out_shape=jax.ShapeDtypeStruct((n_pad, k), jnp.float32),
        grid=(num_blocks,),
        in_specs=[
            pl.BlockSpec((tile, c), lambda i: (i, 0)),
            pl.BlockSpec((c, h_dim), lambda i: (0, 0)),
            pl.BlockSpec((1, h_dim), lambda i: (0, 0)),
            pl.BlockSpec((h_dim, k), lambda i: (0, 0)),
            pl.BlockSpec((1, k), lambda i: (0, 0)),
        ],
        out_specs=pl.BlockSpec((tile, k), lambda i: (i, 0)),
        compiler_params=pltpu.CompilerParams(dimension_semantics=("parallel",)),
    )(x, w1, b1, w2, b2)

    return out[:n] if n_pad != n else out


def attention_layer_wo_gp(x, params, batch_size, temperature=1.0, *, input_dtype=None):
    """Full module semantics: returns (batch_size, cond_batch_size, nof_kernels).

    The repeat over batch_size is pure redundancy; downstream code should
    consume attention_scores(...) directly and broadcast lazily.
    """
    scores = attention_scores(x, params, temperature, input_dtype=input_dtype)
    return jnp.broadcast_to(scores[None, :, :], (batch_size,) + scores.shape)


def init_params(key, c_dim, hidden_dim, nof_kernels):
    """Deterministic init matching the two Linear layers (Kaiming-uniform-ish)."""
    k1, k2, k3, k4 = jax.random.split(key, 4)
    bound1 = 1.0 / jnp.sqrt(c_dim)
    bound2 = 1.0 / jnp.sqrt(hidden_dim)
    return {
        "w1": jax.random.uniform(k1, (c_dim, hidden_dim), jnp.float32, -bound1, bound1),
        "b1": jax.random.uniform(k2, (hidden_dim,), jnp.float32, -bound1, bound1),
        "w2": jax.random.uniform(k3, (hidden_dim, nof_kernels), jnp.float32, -bound2, bound2),
        "b2": jax.random.uniform(k4, (nof_kernels,), jnp.float32, -bound2, bound2),
    }


def _reference(x, params, batch_size, temperature=1.0):
    h = jnp.maximum(x @ params["w1"] + params["b1"], 0.0)
    s = (h @ params["w2"] + params["b2"]) / temperature
    s = jax.nn.softmax(s, axis=-1)
    return jnp.broadcast_to(s[None], (batch_size,) + s.shape)


if __name__ == "__main__":
    key = jax.random.PRNGKey(0)
    kx, kp, kx2, kx3 = jax.random.split(key, 4)

    # ---- Small case (module-typical shapes): exercises the tiny no-grid path ----
    cond_batch_size = 8
    c_dim = 32
    hidden_dim = 32
    nof_kernels = 8
    batch_size = 2

    x = jax.random.normal(kx, (cond_batch_size, c_dim), jnp.float32)
    params = init_params(kp, c_dim, hidden_dim, nof_kernels)

    out = attention_layer_wo_gp(x, params, batch_size, temperature=1.0)
    out = jax.block_until_ready(out)
    ref = _reference(x, params, batch_size, temperature=1.0)
    assert out.shape == (batch_size, cond_batch_size, nof_kernels), out.shape
    assert jnp.allclose(out, ref, atol=1e-3, rtol=1e-3), "mismatch vs reference (small)"
    assert jnp.allclose(out.sum(-1), 1.0, atol=1e-4), "rows do not sum to 1 (small)"

    # ---- Larger, non-divisible N: exercises the padded adaptive-tile path ----
    n_big = 300
    x_big = jax.random.normal(kx2, (n_big, c_dim), jnp.float32)
    out_big = jax.block_until_ready(attention_scores(x_big, params, temperature=2.0))
    ref_big = _reference(x_big, params, 1, temperature=2.0)[0]
    assert out_big.shape == (n_big, nof_kernels), out_big.shape
    assert jnp.allclose(out_big, ref_big, atol=1e-3, rtol=1e-3), "mismatch vs reference (tiled)"
    assert jnp.allclose(out_big.sum(-1), 1.0, atol=1e-4), "rows do not sum to 1 (tiled)"

    # ---- Large N with bf16 inputs (the v6e/v7x bandwidth-bound setting) ----
    n_bf16 = 1024
    x_bf = jax.random.normal(kx3, (n_bf16, c_dim), jnp.float32)
    out_bf = jax.block_until_ready(
        attention_scores(x_bf, params, temperature=1.0, input_dtype=jnp.bfloat16))
    ref_bf = _reference(x_bf, params, 1, temperature=1.0)[0]
    assert out_bf.shape == (n_bf16, nof_kernels), out_bf.shape
    assert jnp.allclose(out_bf, ref_bf, atol=2e-2, rtol=2e-2), "mismatch vs reference (bf16)"
    assert jnp.allclose(out_bf.sum(-1), 1.0, atol=1e-4), "rows do not sum to 1 (bf16)"

    print("KERNEL_OK")
</pallas_src>

<mosaic_0001>
module attributes {stable_mosaic.version = 11 : i64} {
  func.func @_attn_scores_kernel(%arg0: memref<8x32xf32, #tpu.memory_space<vmem>>, %arg1: memref<32x32xf32, #tpu.memory_space<vmem>>, %arg2: memref<1x32xf32, #tpu.memory_space<vmem>>, %arg3: memref<32x8xf32, #tpu.memory_space<vmem>>, %arg4: memref<1x8xf32, #tpu.memory_space<vmem>>, %arg5: memref<8x8xf32, #tpu.memory_space<vmem>>) attributes {dimension_semantics = [], scalar_prefetch = 0 : i64, scratch_operands = 0 : i64, tpu.core_type = #tpu.core_type<tc>} {
    %c0 = arith.constant 0 : index
    %c0_0 = arith.constant 0 : index
    %0 = vector.load %arg0[%c0, %c0_0] : memref<8x32xf32, #tpu.memory_space<vmem>>, vector<8x32xf32>
    %c0_1 = arith.constant 0 : index
    %c0_2 = arith.constant 0 : index
    %1 = vector.load %arg1[%c0_1, %c0_2] : memref<32x32xf32, #tpu.memory_space<vmem>>, vector<32x32xf32>
    %cst = arith.constant dense<0.000000e+00> : vector<8x32xf32>
    %2 = tpu.matmul %0, %1, %cst {dimension_numbers = #tpu.dot_dimension_numbers<[1], [0], [0], [1], [0, 0, 1, 1], [], []>} : vector<8x32xf32>, vector<32x32xf32>, vector<8x32xf32> -> vector<8x32xf32>
    %c0_3 = arith.constant 0 : index
    %c0_4 = arith.constant 0 : index
    %3 = vector.load %arg2[%c0_3, %c0_4] : memref<1x32xf32, #tpu.memory_space<vmem>>, vector<1x32xf32>
    %4 = vector.broadcast %3 : vector<1x32xf32> to vector<8x32xf32>
    %5 = arith.addf %2, %4 : vector<8x32xf32>
    %cst_5 = arith.constant 0.000000e+00 : f32
    %6 = vector.broadcast %cst_5 : f32 to vector<8x32xf32>
    %7 = arith.maximumf %5, %6 : vector<8x32xf32>
    %c0_6 = arith.constant 0 : index
    %c0_7 = arith.constant 0 : index
    %8 = vector.load %arg3[%c0_6, %c0_7] : memref<32x8xf32, #tpu.memory_space<vmem>>, vector<32x8xf32>
    %cst_8 = arith.constant dense<0.000000e+00> : vector<8x8xf32>
    %9 = tpu.matmul %7, %8, %cst_8 {dimension_numbers = #tpu.dot_dimension_numbers<[1], [0], [0], [1], [0, 0, 1, 1], [], []>} : vector<8x32xf32>, vector<32x8xf32>, vector<8x8xf32> -> vector<8x8xf32>
    %c0_9 = arith.constant 0 : index
    %c0_10 = arith.constant 0 : index
    %10 = vector.load %arg4[%c0_9, %c0_10] : memref<1x8xf32, #tpu.memory_space<vmem>>, vector<1x8xf32>
    %11 = vector.broadcast %10 : vector<1x8xf32> to vector<8x8xf32>
    %12 = arith.addf %9, %11 : vector<8x8xf32>
    %cst_11 = arith.constant dense<0xFF800000> : vector<8xf32>
    %13 = vector.multi_reduction <maximumf>, %12, %cst_11 [1] : vector<8x8xf32> to vector<8xf32>
    %14 = vector.shape_cast %13 : vector<8xf32> to vector<8x1xf32>
    %15 = vector.broadcast %14 : vector<8x1xf32> to vector<8x8xf32>
    %16 = arith.subf %12, %15 : vector<8x8xf32>
    %17 = math.exp %16 : vector<8x8xf32>
    %cst_12 = arith.constant dense<0.000000e+00> : vector<8xf32>
    %18 = vector.multi_reduction <add>, %17, %cst_12 [1] : vector<8x8xf32> to vector<8xf32>
    %19 = vector.shape_cast %18 : vector<8xf32> to vector<8x1xf32>
    %20 = vector.broadcast %19 : vector<8x1xf32> to vector<8x8xf32>
    %21 = arith.divf %17, %20 : vector<8x8xf32>
    %c0_13 = arith.constant 0 : index
    %c0_14 = arith.constant 0 : index
    %22 = vector.load %arg5[%c0_13, %c0_14] : memref<8x8xf32, #tpu.memory_space<vmem>>, vector<8x8xf32>
    tpu.vector_store %arg5[%c0_13, %c0_14], %21 {strides = array<i32>} : memref<8x8xf32, #tpu.memory_space<vmem>>, vector<8x8xf32>,
    return
  }
}

</mosaic_0001>

<bundles_post_ra>
// kernel: tpu_custom_call.1
= control target key start
LH: loop header
LB: loop body
LE: loop exit
PB: predicated region body
PF: predicated region fallthrough
CT: control target
= control target key end

     0   :  { %v284_v1 = vmov 0.0   ;;  %vm285_vm0 = vmmov 0   ;;  %s358_s0 = inlined_call_operand.vmem [shape: f32[8,32], index: 0, kind: input, shape index: {}]   ;;  %s359_s1 = inlined_call_operand.vmem [shape: f32[32,32], index: 1, kind: input, shape index: {}]   ;;  %s360_s2 = inlined_call_operand.vmem [shape: f32[1,32], index: 2, kind: input, shape index: {}]   ;;  %s361_s3 = inlined_call_operand.vmem [shape: f32[32,8], index: 3, kind: input, shape index: {}]   ;;  %s362_s4 = inlined_call_operand.vmem [shape: f32[1,8], index: 4, kind: input, shape index: {}]   ;;  %s363_s5 = inlined_call_operand.hbm [shape: f32[8,8], index: 5, kind: output, shape index: {}]  }
   0x1   :  { %v25_v0 = vld [vmem:[%s359_s1 + $0x18] sm:$0xff]  ;;  %233 = vmatprep.subr.mxu0 %v284_v1  ;;  %v24_v2 = vld [vmem:[%s359_s1 + $0x10] sm:$0xff]  ;;  %241 = vmatprep.mubr.msk.f32.mxu0 %vm285_vm0, %v284_v1 }
   0x2   :  { %v111_v3 = vld [vmem:[%s361_s3 + $0x18] sm:$0xff]  ;;  %234 = vmatpush3.msra.mxu0 %v25_v0  ;;  %244 = vmatprep.subr.mxu1 %v284_v1 }
   0x3   :  { %10 = vsyncpa [#allocation3], 0  ;;  %235 = vmatprep.subr.mxu0 %v284_v1  ;;  %v23_v4 = vld [vmem:[%s359_s1 + $0x8] sm:$0xff]  ;;  %245 = vmatpush3.msra.mxu1 %v111_v3  ;;  %v22_v5 = vld [vmem:[%s359_s1] sm:$0xff]  ;;  %vm33_vm1 = vcmask 261120   ;;  %vm192_vm2 = vcmask 64512  }
   0x4   :  { %236 = vmatpush3.msra.mxu0 %v24_v2  ;;  %246 = vmatprep.subr.mxu1 %v284_v1  ;;  %v21_v6 = vld [vmem:[%s358_s0] sm:$0xff]  ;;  %v110_v7 = vld [vmem:[%s361_s3 + $0x10] sm:$0xff]  ;;  %v109_v8 = vld [vmem:[%s361_s3 + $0x8] sm:$0xff] }
   0x5   :  { %237 = vmatprep.subr.mxu0 %v284_v1  ;;  %252 = vmatprep.mubr.msk.f32.mxu1 %vm285_vm0, %v284_v1  ;;  %v108_v9 = vld [vmem:[%s361_s3] sm:$0xff] }
   0x6   :  { %238 = vmatpush3.msra.mxu0 %v23_v4  ;;  %247 = vmatpush3.msra.mxu1 %v110_v7  ;;  %v219_v10 = vld [vmem:[%s360_s2] ss:$0 sm:$0xff]  ;;  %s286_s2 = smov [#allocation2]  }
   0x7   :  { %239 = vmatprep.subr.mxu0 %v284_v1  ;;  %248 = vmatprep.subr.mxu1 %v284_v1  ;;  %v221_v15 = vld [vmem:[%s362_s4] ss:$0 sm:$0xff]  ;;  %s211_s3 = sshll.u32 %s286_s2, 4  ;;  %s212_s3 = int_to_ptr.vmem [resolvable:$true] %s211_s3 }
   0x8   :  { %240 = vmatpush3.msra.mxu0 %v22_v5  ;;  %249 = vmatpush3.msra.mxu1 %v109_v8  ;;  %s262_s4 = scalar_lea.vmem %s212_s3, 128  ;;  %p267_p1 = scmp.lt.s32.totalorder %s212_s3, %s212_s3 }
   0x9   :  { %242 = vmatmul.mubr.msk.f32.vlgmr.msra.gmra.mxu0 %vm33_vm1, %v21_v6  ;;  %250 = vmatprep.subr.mxu1 %v284_v1  ;;  %p263_p0 = scmp.ne.s32.totalorder %s212_s3, %s262_s4  ;;  %p268_p2 = scmp.lt.s32.totalorder %s262_s4, %s262_s4 }
   0xa   :  { %251 = vmatpush3.msra.mxu1 %v108_v9 }
   0xb   :  { %p269_p3 = por %p268_p2, %p267_p1 }
   0xd   :  { %p270_p4 = pnand %p269_p3, %p263_p0 }
  0xc9   :  { %v103_v11 = vpop.f32.mrf.mxu0 }
  0xca   :  { %v104_v12 = vadd.f32 %v219_v10, %v103_v11 }
  0xcb   :  { %v243_v13 = vpop.f32.mrf.mxu0 }
  0xcc   :  { %v107_v14 = vmax.f32 %v104_v12, 0.0 }
  0xce   :  { %253 = vmatmul.mubr.msk.f32.vlgmr.msra.gmra.mxu1 %vm33_vm1, %v107_v14 }
 0x18e   :  { %v188_v16 = vpop.f32.mrf.mxu1 }
 0x18f   :  { %v189_v17 = vadd.f32 %v221_v15, %v188_v16 }
 0x190   :  { %v254_v18 = vpop.f32.mrf.mxu1 }
 0x191   :  { %v193_v19 = vsel %vm192_vm2, %v189_v17, -inf }
 0x192   :  { %194 = vmax.xlane.f32.xlu0 %v193_v19 }
 0x21b   :  { %v195_v20 = vpop.xlane.xlu0 %194 }
 0x21c   :  { %v196_v21 = vsub.f32 %v189_v17, %v195_v20 }
 0x21e   :  { %v197_v22 = vmul.f32 1.442695, %v196_v21 }
 0x220   :  { %258 = vpow2.f32 %v197_v22 }
 0x22d   :  { %v259_v23 = vpop.eup %258 }
 0x22e   :  { %v199_v24 = vsel %vm192_vm2, %v259_v23, 0.0 }
 0x22f   :  { %200 = vadd.xlane.f32.xlu0 %v199_v24 }
 0x2b8   :  { %v201_v25 = vpop.xlane.xlu0 %200 }
 0x2b9   :  { %260 = vrcp.f32 %v201_v25 }
 0x2c6   :  { %v261_v26 = vpop.eup %260 }
 0x2c7   :  { %v203_v27 = vmul.f32 %v261_v26, %v259_v23 }
 0x2c9   :  { %204 = vst.msk [vmem:[#allocation2] sm:$0xff] %vm192_vm2, %v203_v27 }
 0x2ca   :  { %273 = shalt.err (!%p270_p4)
}
 0x2cb   :  { %214 = dma.vmem_to_hbm [thread:$0]  %s212_s3, 128, %s363_s5, [#allocation3]  }
 0x2cc   :  { %282 = dma.done.wait [#allocation3], 128  }
 0x2cd   :  { %283 = vsyncadd [#allocation3], 4294967168 }
 0x2ce   :  { %218 = vsyncpa [#allocation3], 1 }

</bundles_post_ra>
